<compile_context>
chip_gen: v5e
topology: v5e:2x2
jax: 0.10.0
libtpu: 0.0.40
codegen_flags: <defaults>
</compile_context>

<pallas_src>
import math

import jax
import jax.numpy as jnp
from jax.experimental import pallas as pl
from jax.experimental.pallas import tpu as pltpu


def _round_up(x: int, m: int) -> int:
    return ((x + m - 1) // m) * m


def _fused_teacher_kernel(x_ref, w_ref, b_ref, o_ref):
    # x_ref: [TB, P]          padded activation tile
    # w_ref: [L, P, P]        weights, already [in, out] layout, zero-padded
    # b_ref: [L, 1, P]        biases, zero-padded
    # o_ref: [TB, P]          padded output tile (lane-dense store)
    act = x_ref[...].astype(jnp.float32)
    num_layers = w_ref.shape[0]
    for layer in range(num_layers):  # static unroll; L is small and fixed
        act = jnp.dot(act, w_ref[layer], preferred_element_type=jnp.float32)
        act = act + b_ref[layer]
    o_ref[...] = act.astype(o_ref.dtype)


def linear_teacher_forward(x, params, *, block_batch: int = 128):
    """Fused equivalent of Debug__LinearTeacher.forward (all Linears in one kernel)."""
    batch, in_f = x.shape
    num_layers = len(params)
    out_f = params[-1][0].shape[0]

    # One common padded width for every layer (in / mid / out all <= pad_w).
    widths = [in_f] + [w.shape[0] for (w, _) in params]
    pad_w = _round_up(max(widths), 128)

    # Batch tiling: sublane-aligned tiles, grid over batch marked "parallel".
    tb = min(block_batch, _round_up(batch, 8))
    pad_b = _round_up(batch, tb)
    grid = (pad_b // tb,)

    # Host-side packing: pre-transpose weights to [in, out], zero-pad, stack.
    w_stack = jnp.zeros((num_layers, pad_w, pad_w), jnp.float32)
    b_stack = jnp.zeros((num_layers, 1, pad_w), jnp.float32)
    for l, (w, b) in enumerate(params):
        of, inf_ = w.shape
        w_stack = w_stack.at[l, :inf_, :of].set(w.T.astype(jnp.float32))
        b_stack = b_stack.at[l, 0, :of].set(b.astype(jnp.float32))

    x_pad = jnp.zeros((pad_b, pad_w), x.dtype).at[:batch, :in_f].set(x)

    flops = 2 * pad_b * pad_w * pad_w * num_layers
    bytes_accessed = (
        x_pad.size * x_pad.dtype.itemsize
        + w_stack.size * w_stack.dtype.itemsize
        + b_stack.size * b_stack.dtype.itemsize
        + pad_b * pad_w * jnp.dtype(x.dtype).itemsize
    )

    out_pad = pl.pallas_call(
        _fused_teacher_kernel,
        out_shape=jax.ShapeDtypeStruct((pad_b, pad_w), x.dtype),
        grid=grid,
        in_specs=[
            pl.BlockSpec((tb, pad_w), lambda i: (i, 0)),
            pl.BlockSpec((num_layers, pad_w, pad_w), lambda i: (0, 0, 0)),
            pl.BlockSpec((num_layers, 1, pad_w), lambda i: (0, 0, 0)),
        ],
        out_specs=pl.BlockSpec((tb, pad_w), lambda i: (i, 0)),
        compiler_params=pltpu.CompilerParams(
            dimension_semantics=("parallel",),
        ),
        cost_estimate=pl.CostEstimate(
            flops=flops, transcendentals=0, bytes_accessed=bytes_accessed
        ),
    )(x_pad, w_stack, b_stack)

    return out_pad[:batch, :out_f]


def init_linear_teacher_params(key, in_features, out_features, mid_width,
                               num_layers, bias=True, dtype=jnp.float32):
    """Deterministic params mimicking torch.nn.Linear default init
    (uniform(-1/sqrt(fan_in), 1/sqrt(fan_in)) for both weight and bias)."""
    if num_layers == 1:
        dims = [(in_features, out_features)]
    else:
        dims = [(in_features, mid_width)]
        dims += [(mid_width, mid_width)] * (num_layers - 2)
        dims += [(mid_width, out_features)]

    params = []
    for (fan_in, fan_out) in dims:
        key, kw, kb = jax.random.split(key, 3)
        bound = 1.0 / math.sqrt(fan_in)
        w = jax.random.uniform(kw, (fan_out, fan_in), dtype=dtype,
                               minval=-bound, maxval=bound)
        if bias:
            b = jax.random.uniform(kb, (fan_out,), dtype=dtype,
                                   minval=-bound, maxval=bound)
        else:
            b = jnp.zeros((fan_out,), dtype=dtype)
        params.append((w, b))
    return params


def linear_teacher_reference(x, params):
    for (w, b) in params:
        x = x @ w.T + b[None, :]
    return x


if __name__ == "__main__":
    key = jax.random.PRNGKey(0)

    # Small shapes consistent with the module: batch=8, in=32, mid=64, out=16,
    # num_layers=3 (exercises first / middle / last layers).
    batch, in_features, mid_width, out_features, num_layers = 8, 32, 64, 16, 3

    key, kx = jax.random.split(key)
    x = jax.random.normal(kx, (batch, in_features), dtype=jnp.float32)

    params = init_linear_teacher_params(
        key, in_features, out_features, mid_width, num_layers, bias=True)

    y = linear_teacher_forward(x, params)
    y = jax.block_until_ready(y)

    y_ref = linear_teacher_reference(x, params)
    assert y.shape == (batch, out_features)
    assert jnp.allclose(y, y_ref, atol=1e-4, rtol=1e-4)

    print("KERNEL_OK")
</pallas_src>

<mosaic_0001>
module attributes {stable_mosaic.version = 11 : i64} {
  func.func @_fused_teacher_kernel(%arg0: i32, %arg1: memref<8x128xf32, #tpu.memory_space<vmem>>, %arg2: memref<3x128x128xf32, #tpu.memory_space<vmem>>, %arg3: memref<3x1x128xf32, #tpu.memory_space<vmem>>, %arg4: memref<8x128xf32, #tpu.memory_space<vmem>>) attributes {dimension_semantics = [#tpu.dimension_semantics<parallel>], iteration_bounds = array<i64: 1>, scalar_prefetch = 0 : i64, scratch_operands = 0 : i64, tpu.core_type = #tpu.core_type<tc>, window_params = [{transform_indices = @transform_0, window_bounds = array<i64: 8, 128>}, {pipeline_mode = #tpu.pipeline_mode<synchronous>, transform_indices = @transform_1, window_bounds = array<i64: 3, 128, 128>}, {pipeline_mode = #tpu.pipeline_mode<synchronous>, transform_indices = @transform_2, window_bounds = array<i64: 3, 1, 128>}, {transform_indices = @transform_3, window_bounds = array<i64: 8, 128>}]} {
    %c0 = arith.constant 0 : index
    %c0_0 = arith.constant 0 : index
    %0 = vector.load %arg1[%c0, %c0_0] : memref<8x128xf32, #tpu.memory_space<vmem>>, vector<8x128xf32>
    %c0_1 = arith.constant 0 : index
    %c0_2 = arith.constant 0 : index
    %c0_3 = arith.constant 0 : index
    %1 = vector.load %arg2[%c0_1, %c0_2, %c0_3] : memref<3x128x128xf32, #tpu.memory_space<vmem>>, vector<1x128x128xf32>
    %2 = vector.shape_cast %1 : vector<1x128x128xf32> to vector<128x128xf32>
    %cst = arith.constant dense<0.000000e+00> : vector<8x128xf32>
    %3 = tpu.matmul %0, %2, %cst {dimension_numbers = #tpu.dot_dimension_numbers<[1], [0], [0], [1], [0, 0, 1, 1], [], []>} : vector<8x128xf32>, vector<128x128xf32>, vector<8x128xf32> -> vector<8x128xf32>
    %c0_4 = arith.constant 0 : index
    %c0_5 = arith.constant 0 : index
    %c0_6 = arith.constant 0 : index
    %4 = vector.load %arg3[%c0_4, %c0_5, %c0_6] : memref<3x1x128xf32, #tpu.memory_space<vmem>>, vector<1x1x128xf32>
    %5 = vector.shape_cast %4 : vector<1x1x128xf32> to vector<1x128xf32>
    %6 = vector.broadcast %5 : vector<1x128xf32> to vector<8x128xf32>
    %7 = arith.addf %3, %6 : vector<8x128xf32>
    %c1 = arith.constant 1 : index
    %c0_7 = arith.constant 0 : index
    %c0_8 = arith.constant 0 : index
    %8 = vector.load %arg2[%c1, %c0_7, %c0_8] : memref<3x128x128xf32, #tpu.memory_space<vmem>>, vector<1x128x128xf32>
    %9 = vector.shape_cast %8 : vector<1x128x128xf32> to vector<128x128xf32>
    %cst_9 = arith.constant dense<0.000000e+00> : vector<8x128xf32>
    %10 = tpu.matmul %7, %9, %cst_9 {dimension_numbers = #tpu.dot_dimension_numbers<[1], [0], [0], [1], [0, 0, 1, 1], [], []>} : vector<8x128xf32>, vector<128x128xf32>, vector<8x128xf32> -> vector<8x128xf32>
    %c1_10 = arith.constant 1 : index
    %c0_11 = arith.constant 0 : index
    %c0_12 = arith.constant 0 : index
    %11 = vector.load %arg3[%c1_10, %c0_11, %c0_12] : memref<3x1x128xf32, #tpu.memory_space<vmem>>, vector<1x1x128xf32>
    %12 = vector.shape_cast %11 : vector<1x1x128xf32> to vector<1x128xf32>
    %13 = vector.broadcast %12 : vector<1x128xf32> to vector<8x128xf32>
    %14 = arith.addf %10, %13 : vector<8x128xf32>
    %c2 = arith.constant 2 : index
    %c0_13 = arith.constant 0 : index
    %c0_14 = arith.constant 0 : index
    %15 = vector.load %arg2[%c2, %c0_13, %c0_14] : memref<3x128x128xf32, #tpu.memory_space<vmem>>, vector<1x128x128xf32>
    %16 = vector.shape_cast %15 : vector<1x128x128xf32> to vector<128x128xf32>
    %cst_15 = arith.constant dense<0.000000e+00> : vector<8x128xf32>
    %17 = tpu.matmul %14, %16, %cst_15 {dimension_numbers = #tpu.dot_dimension_numbers<[1], [0], [0], [1], [0, 0, 1, 1], [], []>} : vector<8x128xf32>, vector<128x128xf32>, vector<8x128xf32> -> vector<8x128xf32>
    %c2_16 = arith.constant 2 : index
    %c0_17 = arith.constant 0 : index
    %c0_18 = arith.constant 0 : index
    %18 = vector.load %arg3[%c2_16, %c0_17, %c0_18] : memref<3x1x128xf32, #tpu.memory_space<vmem>>, vector<1x1x128xf32>
    %19 = vector.shape_cast %18 : vector<1x1x128xf32> to vector<1x128xf32>
    %20 = vector.broadcast %19 : vector<1x128xf32> to vector<8x128xf32>
    %21 = arith.addf %17, %20 : vector<8x128xf32>
    %c0_19 = arith.constant 0 : index
    %c0_20 = arith.constant 0 : index
    %22 = vector.load %arg4[%c0_19, %c0_20] : memref<8x128xf32, #tpu.memory_space<vmem>>, vector<8x128xf32>
    tpu.vector_store %arg4[%c0_19, %c0_20], %21 {strides = array<i32>} : memref<8x128xf32, #tpu.memory_space<vmem>>, vector<8x128xf32>,
    return
  }
  func.func @transform_0(%arg0: i32) -> (i32, i32) {
    %c0_i32 = arith.constant 0 : i32
    %c0_i32_0 = arith.constant 0 : i32
    return %arg0, %c0_i32 : i32, i32
  }
  func.func @transform_1(%arg0: i32) -> (i32, i32, i32) {
    %c0_i32 = arith.constant 0 : i32
    %c0_i32_0 = arith.constant 0 : i32
    %c0_i32_1 = arith.constant 0 : i32
    %c0_i32_2 = arith.constant 0 : i32
    return %c0_i32, %c0_i32_0, %c0_i32_1 : i32, i32, i32
  }
  func.func @transform_2(%arg0: i32) -> (i32, i32, i32) {
    %c0_i32 = arith.constant 0 : i32
    %c0_i32_0 = arith.constant 0 : i32
    %c0_i32_1 = arith.constant 0 : i32
    %c0_i32_2 = arith.constant 0 : i32
    return %c0_i32, %c0_i32_0, %c0_i32_1 : i32, i32, i32
  }
  func.func @transform_3(%arg0: i32) -> (i32, i32) {
    %c0_i32 = arith.constant 0 : i32
    %c0_i32_0 = arith.constant 0 : i32
    return %arg0, %c0_i32 : i32, i32
  }
}

</mosaic_0001>

<bundles_post_ra>
// kernel: tpu_custom_call.1
= control target key start
LH: loop header
LB: loop body
LE: loop exit
PB: predicated region body
PF: predicated region fallthrough
CT: control target
= control target key end

     0   :  { %8 = vsyncpa [#allocation3], 0  ;;  %s357_s0 = inlined_call_operand.hbm [shape: f32[8,128], index: 0, kind: input, shape index: {}]   ;;  %s358_s1 = inlined_call_operand.hbm [shape: f32[3,128,128], index: 1, kind: input, shape index: {}]   ;;  %s359_s2 = inlined_call_operand.hbm [shape: f32[3,1,128], index: 2, kind: input, shape index: {}]   ;;  %s360_s3 = inlined_call_operand.hbm [shape: f32[8,128], index: 3, kind: output, shape index: {}]  }
   0x1   :  { %9 = vsyncpa [#allocation6], 0  ;;  %s26_s14 = sshll.u32 %s358_s1, 4  ;;  %s27_s14 = int_to_ptr.hbm [resolvable:$true] %s26_s14 }
   0x2   :  { %10 = vsyncpa [#allocation4], 0  ;;  %s317_s15 = smov [#allocation5]   ;;  %s16_s19 = sshll.u32 %s357_s0, 4  ;;  %s17_s19 = int_to_ptr.hbm [resolvable:$true] %s16_s19 }
   0x3   :  { %s28_s16 = sshll.u32 %s317_s15, 4  ;;  %s318_s20 = smov 128   ;;  %s29_s16 = int_to_ptr.vmem [resolvable:$true] %s28_s16 }
   0x4   :  { %s319_s21 = smov 8   ;;  %s320_s22 = smov [#allocation2]  }
   0x5   :  { %34 = dma.hbm_to_vmem [thread:$0]  %s27_s14, 6144, %s29_s16, [#allocation6], %s318_s20, %s318_s20, %s319_s21  }
   0x6   :  { %s18_s23 = sshll.u32 %s320_s22, 4  ;;  %s39_s26 = sshll.u32 %s359_s2, 4  ;;  %s19_s23 = int_to_ptr.vmem [resolvable:$true] %s18_s23  ;;  %s40_s26 = int_to_ptr.hbm [resolvable:$true] %s39_s26 }
   0x7   :  { %21 = dma.hbm_to_vmem [thread:$0]  %s17_s19, 128, %s19_s23, [#allocation3]  }
   0x8   :  { %s321_s1 = smov [#allocation7]   ;;  %s322_s28 = smov 16  }
   0x9   :  { %s41_s27 = sshll.u32 %s321_s1, 4  ;;  %s323_s29 = smov 1   ;;  %s42_s27 = int_to_ptr.vmem [resolvable:$true] %s41_s27 }
   0xa   :  { %47 = dma.hbm_to_vmem [thread:$0]  %s40_s26, 48, %s42_s27, [#allocation6], %s322_s28, %s322_s28, %s323_s29  }
   0xb   :  { %311 = dma.done.wait [#allocation3], 128  }
   0xc   :  { %312 = vsyncadd [#allocation3], 4294967168 }
   0xd   :  { %313 = dma.done.wait [#allocation6], 6192  }
   0xe   :  { %314 = vsyncadd [#allocation6], 4294961104  ;;  %v76_v0 = vld [vmem:[#allocation5 + $0x78] sm:$0xff]  ;;  %v75_v1 = vld [vmem:[#allocation5 + $0x70] sm:$0xff]  ;;  %s324_s0 = smov [#allocation8]   ;;  %s193_s5 = sshll.u32 %s360_s3, 4  ;;  %s194_s5 = int_to_ptr.hbm [resolvable:$true] %s193_s5 }
   0xf   :  { %81 = vmatpush.msra.mxu0 %v76_v0  ;;  %v74_v2 = vld [vmem:[#allocation5 + $0x68] sm:$0xff]  ;;  %v73_v3 = vld [vmem:[#allocation5 + $0x60] sm:$0xff]  ;;  %v117_v4 = vld [vmem:[#allocation5 + $0xf8] sm:$0xff]  ;;  %s191_s2 = sshll.u32 %s324_s0, 4  ;;  %s192_s2 = int_to_ptr.vmem [resolvable:$true] %s191_s2 }
  0x10   :  { %v72_v5 = vld [vmem:[#allocation5 + $0x58] sm:$0xff]  ;;  %123 = vmatpush.msra.mxu1 %v117_v4  ;;  %v116_v6 = vld [vmem:[#allocation5 + $0xf0] sm:$0xff]  ;;  %v115_v7 = vld [vmem:[#allocation5 + $0xe8] sm:$0xff] }
  0x11   :  { %82 = vmatpush.msra.mxu0 %v75_v1  ;;  %v71_v8 = vld [vmem:[#allocation5 + $0x50] sm:$0xff]  ;;  %v114_v9 = vld [vmem:[#allocation5 + $0xe0] sm:$0xff]  ;;  %v70_v10 = vld [vmem:[#allocation5 + $0x48] sm:$0xff] }
  0x12   :  { %124 = vmatpush.msra.mxu1 %v116_v6  ;;  %v113_v11 = vld [vmem:[#allocation5 + $0xd8] sm:$0xff]  ;;  %v69_v12 = vld [vmem:[#allocation5 + $0x40] sm:$0xff]  ;;  %v112_v13 = vld [vmem:[#allocation5 + $0xd0] sm:$0xff] }
  0x13   :  { %83 = vmatpush.msra.mxu0 %v74_v2  ;;  %v68_v14 = vld [vmem:[#allocation5 + $0x38] sm:$0xff]  ;;  %v111_v15 = vld [vmem:[#allocation5 + $0xc8] sm:$0xff]  ;;  %v67_v16 = vld [vmem:[#allocation5 + $0x30] sm:$0xff] }
  0x14   :  { %125 = vmatpush.msra.mxu1 %v115_v7  ;;  %v110_v17 = vld [vmem:[#allocation5 + $0xc0] sm:$0xff]  ;;  %v66_v18 = vld [vmem:[#allocation5 + $0x28] sm:$0xff]  ;;  %v109_v19 = vld [vmem:[#allocation5 + $0xb8] sm:$0xff] }
  0x15   :  { %84 = vmatpush.msra.mxu0 %v73_v3  ;;  %v65_v20 = vld [vmem:[#allocation5 + $0x20] sm:$0xff]  ;;  %v108_v21 = vld [vmem:[#allocation5 + $0xb0] sm:$0xff]  ;;  %v64_v22 = vld [vmem:[#allocation5 + $0x18] sm:$0xff] }
  0x16   :  { %126 = vmatpush.msra.mxu1 %v114_v9  ;;  %v107_v23 = vld [vmem:[#allocation5 + $0xa8] sm:$0xff]  ;;  %v63_v24 = vld [vmem:[#allocation5 + $0x10] sm:$0xff]  ;;  %v106_v25 = vld [vmem:[#allocation5 + $0xa0] sm:$0xff] }
  0x17   :  { %85 = vmatpush.msra.mxu0 %v72_v5  ;;  %v62_v26 = vld [vmem:[#allocation5 + $0x8] sm:$0xff]  ;;  %v105_v27 = vld [vmem:[#allocation5 + $0x98] sm:$0xff]  ;;  %v61_v28 = vld [vmem:[#allocation5] sm:$0xff] }
  0x18   :  { %127 = vmatpush.msra.mxu1 %v113_v11  ;;  %v60_v29 = vld [vmem:[#allocation2] sm:$0xff]  ;;  %v104_v30 = vld [vmem:[#allocation5 + $0x90] sm:$0xff]  ;;  %v103_v31 = vld [vmem:[#allocation5 + $0x88] sm:$0xff] }
  0x19   :  { %86 = vmatpush.msra.mxu0 %v71_v8  ;;  %v102_v32 = vld [vmem:[#allocation5 + $0x80] sm:$0xff]  ;;  %v159_v33 = vld [vmem:[#allocation5 + $0x178] sm:$0xff]  ;;  %v158_v34 = vld [vmem:[#allocation5 + $0x170] sm:$0xff] }
  0x1a   :  { %128 = vmatpush.msra.mxu1 %v112_v13  ;;  %165 = vmatpush.msra.mxu2 %v159_v33  ;;  %v157_v35 = vld [vmem:[#allocation5 + $0x168] sm:$0xff]  ;;  %v156_v36 = vld [vmem:[#allocation5 + $0x160] sm:$0xff]  ;;  %v155_v37 = vld [vmem:[#allocation5 + $0x158] sm:$0xff] }
  0x1b   :  { %87 = vmatpush.msra.mxu0 %v70_v10  ;;  %v154_v38 = vld [vmem:[#allocation5 + $0x150] sm:$0xff]  ;;  %v153_v39 = vld [vmem:[#allocation5 + $0x148] sm:$0xff]  ;;  %v152_v40 = vld [vmem:[#allocation5 + $0x140] sm:$0xff] }
  0x1c   :  { %129 = vmatpush.msra.mxu1 %v111_v15  ;;  %166 = vmatpush.msra.mxu2 %v158_v34  ;;  %v151_v41 = vld [vmem:[#allocation5 + $0x138] sm:$0xff]  ;;  %v150_v42 = vld [vmem:[#allocation5 + $0x130] sm:$0xff]  ;;  %v149_v43 = vld [vmem:[#allocation5 + $0x128] sm:$0xff] }
  0x1d   :  { %88 = vmatpush.msra.mxu0 %v69_v12  ;;  %v148_v44 = vld [vmem:[#allocation5 + $0x120] sm:$0xff]  ;;  %v147_v45 = vld [vmem:[#allocation5 + $0x118] sm:$0xff]  ;;  %v146_v46 = vld [vmem:[#allocation5 + $0x110] sm:$0xff] }
  0x1e   :  { %130 = vmatpush.msra.mxu1 %v110_v17  ;;  %167 = vmatpush.msra.mxu2 %v157_v35  ;;  %v212_v47 = vld [vmem:[#allocation7] ss:$0 sm:$0xff]  ;;  %v145_v50 = vld [vmem:[#allocation5 + $0x108] sm:$0xff]  ;;  %v213_v52 = vld [vmem:[#allocation7 + $0x1] ss:$0 sm:$0xff] }
  0x1f   :  { %89 = vmatpush.msra.mxu0 %v68_v14  ;;  %v144_v51 = vld [vmem:[#allocation5 + $0x100] sm:$0xff] }
  0x20   :  { %131 = vmatpush.msra.mxu1 %v109_v19  ;;  %168 = vmatpush.msra.mxu2 %v156_v36  ;;  %v214_v55 = vld [vmem:[#allocation7 + $0x2] ss:$0 sm:$0xff] }
  0x21   :  { %90 = vmatpush.msra.mxu0 %v67_v16 }
  0x22   :  { %132 = vmatpush.msra.mxu1 %v108_v21  ;;  %169 = vmatpush.msra.mxu2 %v155_v37 }
  0x23   :  { %91 = vmatpush.msra.mxu0 %v66_v18 }
  0x24   :  { %133 = vmatpush.msra.mxu1 %v107_v23  ;;  %170 = vmatpush.msra.mxu2 %v154_v38 }
  0x25   :  { %92 = vmatpush.msra.mxu0 %v65_v20 }
  0x26   :  { %134 = vmatpush.msra.mxu1 %v106_v25  ;;  %171 = vmatpush.msra.mxu2 %v153_v39 }
  0x27   :  { %93 = vmatpush.msra.mxu0 %v64_v22 }
  0x28   :  { %135 = vmatpush.msra.mxu1 %v105_v27  ;;  %172 = vmatpush.msra.mxu2 %v152_v40 }
  0x29   :  { %94 = vmatpush.msra.mxu0 %v63_v24 }
  0x2a   :  { %136 = vmatpush.msra.mxu1 %v104_v30  ;;  %173 = vmatpush.msra.mxu2 %v151_v41 }
  0x2b   :  { %95 = vmatpush.msra.mxu0 %v62_v26 }
  0x2c   :  { %137 = vmatpush.msra.mxu1 %v103_v31  ;;  %174 = vmatpush.msra.mxu2 %v150_v42 }
  0x2d   :  { %96 = vmatpush.msra.mxu0 %v61_v28 }
  0x2e   :  { %97 = vmatmul.f32.vlgmr.msra.gmra.mxu0 %v60_v29  ;;  %138 = vmatpush.msra.mxu1 %v102_v32 }
  0x2f   :  { %175 = vmatpush.msra.mxu2 %v149_v43 }
  0x31   :  { %176 = vmatpush.msra.mxu2 %v148_v44 }
  0x33   :  { %177 = vmatpush.msra.mxu2 %v147_v45 }
  0x35   :  { %178 = vmatpush.msra.mxu2 %v146_v46 }
  0x37   :  { %179 = vmatpush.msra.mxu2 %v145_v50 }
  0x39   :  { %180 = vmatpush.msra.mxu2 %v144_v51 }
  0xab   :  { %v98_v48 = vpop.f32.mrf.mxu0 }
  0xac   :  { %v99_v49 = vadd.f32 %v212_v47, %v98_v48 }
  0xae   :  { %139 = vmatmul.f32.vlgmr.msra.gmra.mxu1 %v99_v49 }
 0x12b   :  { %v140_v53 = vpop.f32.mrf.mxu1 }
 0x12c   :  { %v141_v54 = vadd.f32 %v213_v52, %v140_v53 }
 0x12e   :  { %181 = vmatmul.f32.vlgmr.msra.gmra.mxu2 %v141_v54 }
 0x1b1   :  { %v182_v56 = vpop.f32.mrf.mxu2 }
 0x1b2   :  { %v183_v57 = vadd.f32 %v214_v55, %v182_v56 }
 0x1b4   :  { %185 = vst [vmem:[#allocation8] sm:$0xff] %v183_v57 }
 0x1b5   :  { %196 = dma.vmem_to_hbm [thread:$0]  %s192_s2, 128, %s194_s5, [#allocation4]  }
 0x1b6   :  { %315 = dma.done.wait [#allocation4], 128  }
 0x1b7   :  { %316 = vsyncadd [#allocation4], 4294967168 }
 0x1b8   :  { %201 = vsyncpa [#allocation3], 1 }
 0x1b9   :  { %202 = vsyncpa [#allocation6], 1 }
 0x1ba   :  { %203 = vsyncpa [#allocation4], 1 }

</bundles_post_ra>
